<compile_context>
chip_gen: v7x
topology: tpu7x:2x2x1
jax: 0.10.0
libtpu: 0.0.40
codegen_flags: <defaults>
</compile_context>

<pallas_src>
import functools
import math

import jax
import jax.numpy as jnp
from jax.experimental import pallas as pl
from jax.experimental.pallas import tpu as pltpu


def _round_down(x, m):
    return (x // m) * m


def _tpu_vmem_capacity_bytes():
    try:
        return int(pltpu.get_tpu_info().vmem_capacity_bytes)
    except Exception:
        return 64 * 1024 * 1024   # conservative (v7x per-core figure)


def _budgets():
    cap = _tpu_vmem_capacity_bytes()
    big_vmem = cap >= 96 * 1024 * 1024            # v5e / v6e (128 MiB); v7x is 64 MiB
    target_block = (4 if big_vmem else 2) * 1024 * 1024
    vmem_limit = min(64 * 1024 * 1024, max(32 * 1024 * 1024, cap // 2))
    min_programs = 4 if big_vmem else 8           # >= 2 x #TensorCores, + pipelining headroom
    return target_block, vmem_limit, min_programs


def _divisors_multiple_of(n, unit):
    """Divisors of n that are multiples of `unit`, descending.  Requires unit | n."""
    m = n // unit
    divs = set()
    i = 1
    while i * i <= m:
        if m % i == 0:
            divs.add(i)
            divs.add(m // i)
        i += 1
    return [d * unit for d in sorted(divs, reverse=True)]


def _gated(a, g, approx):
    """outputs * sigmoid(gate), with sigmoid = reciprocal(1 + exp(-g)) on the EUP."""
    denom = 1.0 + jnp.exp(-g)                     # exp -> EUP slot
    if denom.dtype == jnp.float32:
        sig = pl.reciprocal(denom, approx=approx)  # EUP reciprocal, keeps VALU slot free
    else:
        sig = 1.0 / denom                          # bf16 path stays in bf16 end-to-end
    return a * sig.astype(a.dtype)


def _glu_kernel(a_ref, g_ref, o_ref, *, approx):
    a = a_ref[...]
    g = g_ref[...]
    if a.dtype not in (jnp.float32, jnp.bfloat16):
        a = a.astype(jnp.float32)
        g = g.astype(jnp.float32)
    o_ref[...] = _gated(a, g, approx).astype(o_ref.dtype)


def _glu_kernel_fallback(x_ref, o_ref, *, approx):
    # x_ref: (TP, 2, inner); o_ref: (TP, inner).  Only for inner % 128 != 0.
    a = x_ref[:, 0, :]
    g = x_ref[:, 1, :]
    if a.dtype not in (jnp.float32, jnp.bfloat16):
        a = a.astype(jnp.float32)
        g = g.astype(jnp.float32)
    o_ref[...] = _gated(a, g, approx).astype(o_ref.dtype)


def _choose_main_tiles(prefix, inner, itemsize, target_block_bytes, min_programs):
    target_elems = max(8 * 128, target_block_bytes // itemsize)

    # Column tile: largest multiple-of-128 divisor of `inner` such that a block with
    # at least 8 (dense) sublane rows still fits the byte budget.
    col_candidates = _divisors_multiple_of(inner, 128)        # descending
    tc = col_candidates[-1]
    for cand in col_candidates:
        if 8 * cand <= target_elems:
            tc = cand
            break

    # Row tile: multiple of 8 (dense sublanes) filling the remaining budget.
    if prefix <= 8:
        tp = prefix                                           # full-dim block (constraint-safe)
    else:
        row_budget = max(8, _round_down(target_elems // tc, 8))
        tp = min(row_budget, _round_down(prefix, 8))

    def n_programs(tp_, tc_):
        return pl.cdiv(prefix, tp_) * (inner // tc_)

    # Guarantee enough grid programs (v7x megacore + DMA/compute overlap):
    # shrink rows first, then columns.
    while n_programs(tp, tc) < min_programs and tp >= 16:
        tp = max(8, _round_down(tp // 2, 8))
    ci = col_candidates.index(tc)
    while n_programs(tp, tc) < min_programs and ci + 1 < len(col_candidates):
        ci += 1
        tc = col_candidates[ci]
    return tp, tc


def glu_pallas(x, dim=1, *, approx_sigmoid=True, input_buffers=None):
    """Pallas TPU GLU: split `dim` in half, return outputs * sigmoid(gate)."""
    dim = dim % x.ndim
    shape = x.shape
    c = shape[dim]
    assert c % 2 == 0, "GLU split dimension must be even"
    c_half = c // 2
    prefix = math.prod(shape[:dim])
    suffix = math.prod(shape[dim + 1:])
    inner = c_half * suffix          # contiguous elements per half, per prefix row
    out_shape = shape[:dim] + (c_half,) + shape[dim + 1:]

    itemsize = jnp.dtype(x.dtype).itemsize
    target_block, vmem_limit, min_programs = _budgets()
    kernel = functools.partial(_glu_kernel, approx=approx_sigmoid)

    if inner % 128 == 0:
        # Main path: lane-dense 2D slab; halves selected entirely by the index_map.
        tp, tc = _choose_main_tiles(prefix, inner, itemsize, target_block, min_programs)
        n_col_blocks = inner // tc
        x2 = x.reshape(prefix, 2 * inner)

        spec_kwargs = {}
        if input_buffers is not None and input_buffers != 2:
            # Optional deeper input pipelining (sweep 2 vs 3 per generation, e.g. v7x).
            spec_kwargs["pipeline_mode"] = pl.Buffered(input_buffers)

        out2 = pl.pallas_call(
            kernel,
            out_shape=jax.ShapeDtypeStruct((prefix, inner), x.dtype),
            grid=(pl.cdiv(prefix, tp), n_col_blocks),
            in_specs=[
                pl.BlockSpec((tp, tc), lambda p, cb: (p, cb), **spec_kwargs),                 # outputs half
                pl.BlockSpec((tp, tc), lambda p, cb: (p, cb + n_col_blocks), **spec_kwargs),  # gate half
            ],
            out_specs=pl.BlockSpec((tp, tc), lambda p, cb: (p, cb)),
            compiler_params=pltpu.CompilerParams(
                dimension_semantics=("parallel", "parallel"),
                vmem_limit_bytes=vmem_limit,
            ),
        )(x2, x2)                                  # same HBM buffer, two block pipelines
        return out2.reshape(out_shape)

    # Fallback path: per-half chunk is not a multiple of 128 lanes.
    # TODO(synk): pad `inner` up to a multiple of 128 in the wrapper so odd shapes also
    # take the lane-dense main path; only worth it if such shapes are hot.
    x3 = x.reshape(prefix, 2, inner)
    padded_inner = ((inner + 127) // 128) * 128
    # Budget rows against the padded sublane/lane VMEM footprint of the input block.
    tp = max(1, min(prefix, target_block // (2 * 8 * padded_inner * itemsize)))
    kernel_fb = functools.partial(_glu_kernel_fallback, approx=approx_sigmoid)
    out2 = pl.pallas_call(
        kernel_fb,
        out_shape=jax.ShapeDtypeStruct((prefix, inner), x.dtype),
        grid=(pl.cdiv(prefix, tp),),
        in_specs=[pl.BlockSpec((tp, 2, inner), lambda p: (p, 0, 0))],
        out_specs=pl.BlockSpec((tp, inner), lambda p: (p, 0)),
        compiler_params=pltpu.CompilerParams(
            dimension_semantics=("parallel",),
            vmem_limit_bytes=vmem_limit,
        ),
    )(x3)
    return out2.reshape(out_shape)


if __name__ == "__main__":
    key = jax.random.PRNGKey(0)
    k1, k2, k3 = jax.random.split(key, 3)

    # NCHW conv-encoder style input, split along channels (dim=1) -> main path.
    x = jax.random.normal(k1, (2, 4, 16, 16), dtype=jnp.float32)
    out = jax.block_until_ready(glu_pallas(x, dim=1))
    a, g = jnp.split(x, 2, axis=1)
    ref = a * jax.nn.sigmoid(g)
    assert out.shape == ref.shape, (out.shape, ref.shape)
    # approx (EUP) reciprocal -> compare with a slightly relaxed tolerance.
    assert jnp.allclose(out, ref, atol=5e-3, rtol=5e-3), "mismatch vs reference (dim=1, f32)"

    # MLP-style last-dim split with a small odd half-width -> exercises the fallback path.
    x2 = jax.random.normal(k2, (2, 8, 64), dtype=jnp.float32)
    out2 = jax.block_until_ready(glu_pallas(x2, dim=-1))
    a2, g2 = jnp.split(x2, 2, axis=-1)
    ref2 = a2 * jax.nn.sigmoid(g2)
    assert out2.shape == ref2.shape, (out2.shape, ref2.shape)
    assert jnp.allclose(out2, ref2, atol=5e-3, rtol=5e-3), "mismatch vs reference (dim=-1, f32)"

    # bf16 MLP-style split: lane-dense main path, no f32 upcast inside the kernel.
    x3 = jax.random.normal(k3, (4, 16, 256), dtype=jnp.float32).astype(jnp.bfloat16)
    out3 = jax.block_until_ready(glu_pallas(x3, dim=-1))
    a3, g3 = jnp.split(x3.astype(jnp.float32), 2, axis=-1)
    ref3 = a3 * jax.nn.sigmoid(g3)
    assert out3.shape == ref3.shape, (out3.shape, ref3.shape)
    assert jnp.allclose(out3.astype(jnp.float32), ref3, atol=6e-2, rtol=6e-2), \
        "mismatch vs reference (dim=-1, bf16)"

    print("KERNEL_OK")
</pallas_src>

<mosaic_0001>
module attributes {stable_mosaic.version = 11 : i64} {
  func.func @_glu_kernel(%arg0: i32, %arg1: i32, %arg2: memref<2x128xf32, #tpu.memory_space<vmem>>, %arg3: memref<2x128xf32, #tpu.memory_space<vmem>>, %arg4: memref<2x128xf32, #tpu.memory_space<vmem>>) attributes {dimension_semantics = [#tpu.dimension_semantics<parallel>, #tpu.dimension_semantics<parallel>], iteration_bounds = array<i64: 1, 4>, scalar_prefetch = 0 : i64, scratch_operands = 0 : i64, tpu.core_type = #tpu.core_type<tc>, window_params = [{transform_indices = @transform_0, window_bounds = array<i64: 2, 128>}, {transform_indices = @transform_1, window_bounds = array<i64: 2, 128>}, {transform_indices = @transform_2, window_bounds = array<i64: 2, 128>}]} {
    %c0 = arith.constant 0 : index
    %c0_0 = arith.constant 0 : index
    %0 = vector.load %arg2[%c0, %c0_0] : memref<2x128xf32, #tpu.memory_space<vmem>>, vector<2x128xf32>
    %c0_1 = arith.constant 0 : index
    %c0_2 = arith.constant 0 : index
    %1 = vector.load %arg3[%c0_1, %c0_2] : memref<2x128xf32, #tpu.memory_space<vmem>>, vector<2x128xf32>
    %cst = arith.constant 0.000000e+00 : f32
    %2 = vector.broadcast %cst : f32 to vector<2x128xf32>
    %3 = arith.subf %2, %1 : vector<2x128xf32>
    %4 = math.exp %3 : vector<2x128xf32>
    %cst_3 = arith.constant 1.000000e+00 : f32
    %5 = vector.broadcast %cst_3 : f32 to vector<2x128xf32>
    %6 = arith.addf %5, %4 : vector<2x128xf32>
    %7 = tpu.reciprocal %6 {approx = true} : vector<2x128xf32> -> vector<2x128xf32>
    %8 = arith.mulf %0, %7 : vector<2x128xf32>
    %c0_4 = arith.constant 0 : index
    %c0_5 = arith.constant 0 : index
    %9 = vector.load %arg4[%c0_4, %c0_5] : memref<2x128xf32, #tpu.memory_space<vmem>>, vector<2x128xf32>
    tpu.vector_store %arg4[%c0_4, %c0_5], %8 {strides = array<i32>} : memref<2x128xf32, #tpu.memory_space<vmem>>, vector<2x128xf32>,
    return
  }
  func.func @transform_0(%arg0: i32, %arg1: i32) -> (i32, i32) {
    %c0_i32 = arith.constant 0 : i32
    return %arg0, %arg1 : i32, i32
  }
  func.func @transform_1(%arg0: i32, %arg1: i32) -> (i32, i32) {
    %c4_i32 = arith.constant 4 : i32
    %0 = arith.addi %arg1, %c4_i32 : i32
    %c0_i32 = arith.constant 0 : i32
    return %arg0, %0 : i32, i32
  }
  func.func @transform_2(%arg0: i32, %arg1: i32) -> (i32, i32) {
    %c0_i32 = arith.constant 0 : i32
    return %arg0, %arg1 : i32, i32
  }
}

</mosaic_0001>

<bundles_post_ra>
// kernel: tpu_custom_call.1
= control target key start
LH: loop header
LB: loop body
LE: loop exit
PB: predicated region body
PF: predicated region fallthrough
CT: control target
= control target key end

     0   :  { %s949_s0 = inlined_call_operand.hbm [shape: f32[2,1024], index: 0, kind: input, shape index: {}]   ;;  %s950_s1 = inlined_call_operand.hbm [shape: f32[2,1024], index: 1, kind: input, shape index: {}]   ;;  %s951_s2 = inlined_call_operand.hbm [shape: f32[2,512], index: 2, kind: output, shape index: {}]  }
   0x1   :  { %958 = sst [smem:[#allocation12_spill]] %s949_s0 }
   0x2   :  { %7 = vsyncpa [#allocation3], 0 }
   0x3   :  { %9 = vsyncpa [#allocation3 + $0x1], 0 }
   0x4   :  { %10 = vsyncpa [#allocation6], 0 }
   0x5   :  { %12 = vsyncpa [#allocation6 + $0x1], 0 }
   0x6   :  { %13 = vsyncpa [#allocation4], 0 }
   0x7   :  { %15 = vsyncpa [#allocation4 + $0x1], 0  ;;  %s657_s9 = smov 0   ;;  %s659_s10 = smov 0  }
   0x8   :  { %s661_s11 = smov 0   ;;  %s663_s12 = smov 0  }
   0x9   :  { %s665_s13 = smov 0   ;;  %s667_s14 = smov 0  }
   0xa   :  { %s669_s15 = smov 0   ;;  %s671_s16 = smov 0  }
   0xb   :  { %s673_s17 = smov 0  }
   0xc LB: > { %s355_s18 = sadd.s32 4294967295, %s637_s17   ;;  %s356_s19 = sadd.s32 4294967294, %s637_s17   ;;  %s637_s17 = sphi %s673_s17, %s21_s17   ;;  %s633_s16 = sphi %s671_s16, %s987_s16   ;;  %s629_s15 = sphi %s669_s15, %s986_s15   ;;  %s625_s14 = sphi %s667_s14, %s985_s14   ;;  %s621_s13 = sphi %s665_s13, %s984_s13   ;;  %s617_s12 = sphi %s663_s12, %s983_s12   ;;  %s613_s11 = sphi %s661_s11, %s982_s11   ;;  %s609_s10 = sphi %s659_s10, %s981_s10   ;;  %s605_s9 = sphi %s657_s9, %s980_s9  }
   0xd   : > { %s30_s20 = sadd.s32 1, %s633_s16  ;;  %s42_s21 = sadd.s32 1, %s625_s14 }
   0xe   : > { %p31_p0 = scmp.ge.s32.totalorder %s30_s20, 4  ;;  %p49_p1 = scmp.ne.s32.totalorder %s625_s14, %s621_s13 }
   0xf   : > { %p952_p2 = scmp.eq.s32.totalorder %s637_s17, 0  ;;  %p55_p3 = scmp.ne.s32.totalorder %s621_s13, %s617_s12 }
  0x10   : > { %s989_s20 = smov (%p31_p0, %s30_s20), 0  ;;  %p722_p5 = scmp.eq.s32.totalorder %s355_s18, 0 }
  0x11   : > { %959 = sst [smem:[#allocation11_spill]] %s989_s20  ;;  %p718_p4 = por %p952_p2, %p49_p1 }
  0x12   : > { %s38_s24 = ssub.s32 %s633_s16, %s989_s20  ;;  %s65_s25 = sadd.s32 4, %s633_s16 }
  0x13   : > { %p40_p6 = scmp.eq.s32.totalorder %s38_s24, 0  ;;  %p734_p7 = por %p722_p5, %p55_p3 }
  0x14   : > { %s66_s27 = sadd.s32 4, %s989_s20  ;;  %p111_p8 = scmp.eq.s32.totalorder %s355_s18, 3 }
  0x15   : > { %s962_s26 = scalar_select %p734_p7, 1, 0 }
  0x16   : > { %s740_s28 = scalar_select %p40_p6, %s625_s14, %s42_s21  }
  0x17   : > { %s742_s29 = ssub.s32 %s65_s25, %s66_s27  ;;  %p747_p9 = por %p111_p8, %p49_p1 }
  0x18   : > { %p117_p11 = scmp.eq.s32.totalorder %s356_s19, 3  ;;  %p953_p12 = scmp.lt.s32.totalorder %s637_s17, 4 }
  0x19   : > { %s963_s30 = scalar_select %p747_p9, 1, 0 }
  0x1a   : > { %p756_p13 = por %p117_p11, %p55_p3  ;;  %s137_s4 = sand.u32 1, %s625_s14  }
  0x1b   : > { %s359_s5 = sshll.u32 %s137_s4, 1  ;;  %s360_s6 = sshll.u32 %s633_s16, 5 }
  0x1c   : > { %s964_s3 = scalar_select %p756_p13, 1, 0 }
  0x1d   : > { %s965_s0 = sld [smem:[#allocation12_spill]]  ;;  %s141_s21 = scalar_lea.vmem [#allocation2], %s359_s5 }
  0x1e   : > { %s150_s19 = sshll.u32 %s141_s21, 4  ;;  %p775_p0 = pnand %p953_p12, %p718_p4  ;;  %s769_s19 = int_to_ptr.vmem [resolvable:$true] %s150_s19 }
  0x1f   : > { %s138_s25 = scalar_lea.sflag [#allocation3], %s137_s4 }
  0x20   : > { %p468_p8 = pneg %p775_p0 }
  0x23   : > { %s767_s18 = scalar_lea.hbm %s965_s0, %s360_s6  ;;  %s471_s7 = scalar_lea.hbm %s965_s0, 256 }
  0x24   : > { %s466_s27 = scalar_lea.hbm %s767_s18, 32  ;;  %p472_p4 = scmp.lt.u32.totalorder %s767_s18, %s965_s0 }
  0x25   : > { %p467_p6 = scmp.ne.s32.totalorder %s767_s18, %s466_s27  ;;  %p473_p12 = scmp.lt.u32.totalorder %s471_s7, %s466_s27 }
  0x26   : > { %p475_p1 = scmp.lt.u32.totalorder %s466_s27, %s767_s18 }
  0x27   : > { %p469_p11 = pnand %p468_p8, %p467_p6  ;;  %p474_p10 = por %p473_p12, %p472_p4 }
  0x29   : > { %p470_p2 = pneg %p469_p11  ;;  %p476_p3 = por %p475_p1, %p474_p10 }
  0x2b   : > { %p477_p13 = pnand %p476_p3, %p470_p2 }
  0x2d   : > { %480 = shalt.err (!%p477_p13)
}
  0x2e   : > { %s481_s4 = scalar_lea.vmem %s769_s19, 32  ;;  %s639_s5 = smov [#allocation2]  }
  0x2f   : > { %p482_p6 = scmp.ne.s32.totalorder %s769_s19, %s481_s4  ;;  %s486_s22 = sshll.u32 %s639_s5, 4  ;;  %s487_s22 = int_to_ptr.vmem [resolvable:$false] %s486_s22 }
  0x30   : > { %s488_s8 = scalar_lea.vmem %s487_s22, 64  ;;  %p489_p7 = scmp.lt.s32.totalorder %s769_s19, %s487_s22 }
  0x31   : > { %p484_p11 = pnand %p482_p6, %p468_p8  ;;  %p490_p12 = scmp.lt.s32.totalorder %s488_s8, %s481_s4 }
  0x33   : > { %p485_p9 = pneg %p484_p11  ;;  %p491_p4 = por %p490_p12, %p489_p7 }
  0x35   : > { %p492_p10 = pnand %p491_p4, %p485_p9 }
  0x37   : > { %495 = shalt.err (!%p492_p10)
}
  0x38   : > { %380 = dma.hbm_to_vmem [thread:$0]  (!%p775_p0), %s767_s18, 32, %s769_s19, %s138_s25  }
  0x39   : > { %p967_p2 = scmp.lt.s32.totalorder %s637_s17, 5  ;;  %p968_p7 = scmp.ge.s32.totalorder %s637_s17, 1 }
  0x3a   : > { %s72_s27 = sadd.s32 1, %s613_s11  ;;  %p79_p13 = scmp.ne.s32.totalorder %s613_s11, %s609_s10 }
  0x3b   : > { %p810_p9 = pnand %p968_p7, %p967_p2  ;;  %p970_p1 = scmp.eq.s32.totalorder %s742_s29, 0 }
  0x3c   : > { %p971_p3 = scmp.eq.s32.totalorder %s637_s17, 0  ;;  %p85_p6 = scmp.ne.s32.totalorder %s609_s10, %s605_s9 }
  0x3d   : > { %s820_s7 = scalar_select %p970_p1, %s613_s11, %s72_s27  }
  0x3e   : > { %p81_p8 = por %p79_p13, %p971_p3  ;;  %s157_s21 = sand.u32 1, %s613_s11  }
  0x3f   : > { %s287_s18 = scalar_lea.hbm %s950_s1, %s360_s6  ;;  %p834_p0 = por %p85_p6, %p722_p5 }
  0x40   : > { %s361_s25 = sshll.u32 %s157_s21, 1  ;;  %s838_s22 = scalar_lea.hbm %s287_s18, 128 }
  0x41   : > { %s972_s19 = scalar_select %p834_p0, 1, 0 }
  0x42   : > { %p973_p11 = scmp.lt.s32.totalorder %s637_s17, 4  ;;  %s161_s29 = scalar_lea.vmem [#allocation5], %s361_s25 }
  0x43   : > { %s171_s6 = sshll.u32 %s161_s29, 4  ;;  %s158_s23 = scalar_lea.sflag [#allocation6], %s157_s21  ;;  %s846_s6 = int_to_ptr.vmem [resolvable:$true] %s171_s6 }
  0x44   : > { %p842_p12 = pnand %p973_p11, %p81_p8  ;;  %s526_s8 = scalar_lea.hbm %s287_s18, 160 }
  0x45   : > { %p497_p5 = scmp.ne.s32.totalorder %s838_s22, %s526_s8  ;;  %s501_s5 = scalar_lea.hbm %s950_s1, 256 }
  0x46   : > { %p498_p4 = pneg %p842_p12  ;;  %p502_p7 = scmp.lt.u32.totalorder %s838_s22, %s950_s1 }
  0x47   : > { %p503_p13 = scmp.lt.u32.totalorder %s501_s5, %s526_s8  ;;  %p505_p3 = scmp.lt.u32.totalorder %s526_s8, %s838_s22 }
  0x48   : > { %p499_p10 = pnand %p498_p4, %p497_p5 }
  0x49   : > { %p504_p1 = por %p503_p13, %p502_p7 }
  0x4a   : > { %p500_p2 = pneg %p499_p10 }
  0x4b   : > { %p506_p8 = por %p505_p3, %p504_p1 }
  0x4d   : > { %p507_p6 = pnand %p506_p8, %p500_p2 }
  0x4f   : > { %510 = shalt.err (!%p507_p6)
}
  0x50   : > { %s511_s21 = scalar_lea.vmem %s846_s6, 32  ;;  %s640_s18 = smov [#allocation5]  }
  0x51   : > { %p512_p11 = scmp.ne.s32.totalorder %s846_s6, %s511_s21  ;;  %s516_s25 = sshll.u32 %s640_s18, 4  ;;  %s517_s25 = int_to_ptr.vmem [resolvable:$false] %s516_s25 }
  0x52   : > { %s518_s0 = scalar_lea.vmem %s517_s25, 64  ;;  %p519_p0 = scmp.lt.s32.totalorder %s846_s6, %s517_s25 }
  0x53   : > { %p514_p5 = pnand %p512_p11, %p498_p4  ;;  %p520_p7 = scmp.lt.s32.totalorder %s518_s0, %s511_s21 }
  0x55   : > { %p515_p10 = pneg %p514_p5  ;;  %p521_p13 = por %p520_p7, %p519_p0 }
  0x57   : > { %p522_p1 = pnand %p521_p13, %p515_p10 }
  0x59   : > { %525 = shalt.err (!%p522_p1)
}
  0x5a   : > { %383 = dma.hbm_to_vmem [thread:$0]  (!%p842_p12), %s838_s22, 32, %s846_s6, %s158_s23  }
  0x5b   : > { %180 = sbr.rel (%p810_p9) target bundleno = 148 (0x94), region = 28  ;;  %s875_s20 = sand.u32 (!%p810_p9), 1, %s621_s13  }
  0x5c   : > { %s364_s29 = sshll.u32 (!%p810_p9), %s875_s20, 1  ;;  %s183_s8 = scalar_lea.sflag (!%p810_p9), [#allocation3], %s875_s20 }
  0x5d   : > { %s186_s27 = scalar_lea.vmem (!%p810_p9), [#allocation2], %s364_s29  ;;  %p975_p0 = scmp.ne.s32.totalorder (!%p810_p9), %s962_s26, 0 }
  0x62   : > { %592 = dma.done.wait (%p975_p0), %s183_s8, 32  }
  0x63   : > { %594 = vsyncadd (%p975_p0), %s183_s8, 4294967264  ;;  %s191_s22 = sand.u32 1, %s609_s10   ;;  %p976_p9 = scmp.ne.s32.totalorder %s972_s19, 0 }
  0x64   : > { %s365_s9 = sshll.u32 %s191_s22, 1  ;;  %s192_s24 = scalar_lea.sflag [#allocation6], %s191_s22 }
  0x65   : > { %s195_s6 = scalar_lea.vmem [#allocation5], %s365_s9 }
  0x66   : > { %596 = dma.done.wait (%p976_p9), %s192_s24, 32  }
  0x67   : > { %598 = vsyncadd (%p976_p9), %s192_s24, 4294967264  ;;  %v223_v0 = vld [vmem:[%s195_s6] sm:$0x3]  ;;  %v222_v5 = vld [vmem:[%s186_s27] sm:$0x3]  ;;  %s220_s26 = scalar_lea.vmem [#allocation7], %s364_s29 }
  0x68   : > { %v224_v1 = vsub.f32 0.0, %v223_v0  ;;  %s247_s23 = sshll.u32 %s220_s26, 4  ;;  %s368_s4 = sshll.u32 %s629_s15, 5  ;;  %s889_s23 = int_to_ptr.vmem [resolvable:$true] %s247_s23 }
  0x69   : > { %s894_s21 = scalar_lea.hbm %s951_s2, %s368_s4  ;;  %s232_s18 = scalar_lea.sflag [#allocation4], %s875_s20 }
  0x6a   : > { %v225_v2 = vmul.f32 1.442695, %v224_v1  ;;  %s527_s25 = scalar_lea.vmem %s889_s23, 32  ;;  %p977_p4 = scmp.ne.s32.totalorder %s963_s30, 0 }
  0x6b   : > { %p528_p12 = scmp.ne.s32.totalorder %s889_s23, %s527_s25  ;;  %s641_s15 = smov [#allocation7]  }
  0x6c   : > { %462 = vpow2.f32 %v225_v2  ;;  %s531_s0 = sshll.u32 %s641_s15, 4  ;;  %s532_s0 = int_to_ptr.vmem [resolvable:$false] %s531_s0 }
  0x6d   : > { %p529_p2 = pnand %p528_p12, %p977_p4  ;;  %s533_s29 = scalar_lea.vmem %s532_s0, 64 }
  0x6e   : > { %p534_p8 = scmp.lt.s32.totalorder %s889_s23, %s532_s0  ;;  %p535_p6 = scmp.lt.s32.totalorder %s533_s29, %s527_s25 }
  0x6f   : > { %p530_p3 = pneg %p529_p2 }
  0x70   : > { %p536_p11 = por %p535_p6, %p534_p8 }
  0x72   : > { %p537_p5 = pnand %p536_p11, %p530_p3 }
  0x76   : > { %v463_v3 = vpop.eup %462 }
  0x77   : > { %v227_v4 = vadd.f32 1.0, %v463_v3 }
  0x79   : > { %464 = vrcp.f32 %v227_v4 }
  0x83   : > { %v465_v6 = vpop.eup %464 }
  0x84   : > { %v229_v7 = vmul.f32 %v465_v6, %v222_v5 }
  0x86   : > { %230 = vst [vmem:[%s220_s26] sm:$0x3] %v229_v7 }
  0x87   : > { %540 = shalt.err (!%p537_p5)
}
  0x88   : > { %s541_s20 = scalar_lea.hbm %s894_s21, 32  ;;  %s545_s22 = scalar_lea.hbm %s951_s2, 128 }
  0x89   : > { %p542_p10 = scmp.ne.s32.totalorder %s894_s21, %s541_s20  ;;  %p546_p1 = scmp.lt.u32.totalorder %s894_s21, %s951_s2 }
  0x8a   : > { %p547_p0 = scmp.lt.u32.totalorder %s545_s22, %s541_s20  ;;  %p549_p12 = scmp.lt.u32.totalorder %s541_s20, %s894_s21 }
  0x8b   : > { %p543_p7 = pnand %p542_p10, %p977_p4 }
  0x8c   : > { %p548_p9 = por %p547_p0, %p546_p1 }
  0x8d   : > { %p544_p13 = pneg %p543_p7 }
  0x8e   : > { %p550_p2 = por %p549_p12, %p548_p9 }
  0x90   : > { %p551_p3 = pnand %p550_p2, %p544_p13 }
  0x92   : > { %554 = shalt.err (!%p551_p3)
}
  0x93   : > { %375 = dma.vmem_to_hbm [thread:$0]  (%p977_p4), %s889_s23, 32, %s894_s21, %s232_s18  }
  0x94 PF: > { %p389_p8 = scmp.ge.s32.totalorder %s637_s17, 2  ;;  %s259_s6 = sand.u32 1, %s617_s12  }
  0x95   : > { %p978_p6 = scmp.ne.s32.totalorder %s964_s3, 0  ;;  %s260_s26 = scalar_lea.sflag [#allocation4], %s259_s6 }
  0x97   : > { %p385_p11 = pnand %p389_p8, %p978_p6 }
  0x99   : > { %600 = dma.done.wait (!%p385_p11), %s260_s26, 32  }
  0x9a   : > { %602 = vsyncadd (!%p385_p11), %s260_s26, 4294967264  ;;  %s21_s17 = sadd.s32 1, %s637_s17   ;;  %s979_s30 = sld [smem:[#allocation11_spill]] }
  0x9b   : > { %p18_p5 = scmp.ge.s32.totalorder %s21_s17, 6   ;;  %s980_s9 = smov %s609_s10 }
  0x9c   : > { %s981_s10 = smov %s613_s11  ;;  %s982_s11 = smov %s820_s7 }
  0x9d   : > { %s983_s12 = smov %s621_s13  ;;  %s984_s13 = smov %s625_s14 }
  0x9e   : > { %s985_s14 = smov %s740_s28  ;;  %s986_s15 = smov %s633_s16 }
  0x9f   :  { %20 = sbr.rel (!%p18_p5) target bundleno = 12 (0xc), region = 86 }
  0xa0   : > { %s987_s16 = smov %s979_s30 }
  0xa6   :  { %265 = vsyncpa [#allocation3], 1 }
  0xa7   :  { %267 = vsyncpa [#allocation3 + $0x1], 1 }
  0xa8   :  { %268 = vsyncpa [#allocation6], 1 }
  0xa9   :  { %270 = vsyncpa [#allocation6 + $0x1], 1 }
  0xaa   :  { %271 = vsyncpa [#allocation4], 1 }
  0xab   :  { %273 = vsyncpa [#allocation4 + $0x1], 1 }

</bundles_post_ra>
